<compile_context>
chip_gen: v7x
topology: tpu7x:2x2x1
jax: 0.10.0
libtpu: 0.0.40
codegen_flags: <defaults>
</compile_context>

<pallas_src>
import math

import jax
import jax.numpy as jnp
from jax import lax
from jax.experimental import pallas as pl
from jax.experimental.pallas import tpu as pltpu


def _make_embedding_dropout_kernel(n_embs: int, threshold_i32: int, inv_keep: float):
    """Kernel: one shared keep-mask per tile, applied to every embedding."""

    def kernel(bits_ref, *refs):
        emb_refs = refs[:n_embs]
        out_refs = refs[n_embs:]

        # Single signed-int compare (bits were sign-bit-flipped outside the
        # kernel, so this is equivalent to an unsigned compare against
        # round(keep_prob * 2**32)).  Same mask for every embedding.
        keep = bits_ref[...] < jnp.int32(threshold_i32)

        for e_ref, o_ref in zip(emb_refs, out_refs):
            x = e_ref[...]
            scale = jnp.asarray(inv_keep, dtype=x.dtype)
            o_ref[...] = jnp.where(keep, x * scale, jnp.zeros_like(x))

    return kernel


def embedding_dropout(embs, p: float, seed: int, training: bool = True):
    """JAX/Pallas equivalent of EmbeddingDropout.forward(*embs)."""
    if p < 0.0 or p > 1.0:
        raise ValueError(f"dropout probability has to be between 0 and 1, but got {p}")
    embs = tuple(embs)
    if (not training) or p == 0.0:
        return embs

    shape = embs[0].shape
    for e in embs:
        if e.shape != shape:
            # PyTorch relies on broadcasting the embs[0]-shaped mask; here we
            # require identical shapes so the flattened layout stays aligned.
            raise ValueError("all embeddings must have the same shape as embs[0]")

    keep_prob = 1.0 - p
    # NOTE: p == 1.0 is degenerate (torch yields NaN via 0/0); here everything
    # is dropped to exact zeros.
    inv_keep = (1.0 / keep_prob) if keep_prob > 0.0 else float("inf")

    # ---- lane-dense flattening: (total // lane, lane), lane a multiple of 128
    total = math.prod(shape)
    hidden = shape[-1]
    lane = None
    for w in (1024, 512, 256, 128):
        if total % w == 0:
            lane = w
            break
    if lane is None:
        lane = hidden  # fallback: keep the natural (rows, hidden) layout
    n_rows = total // lane

    # ---- row-tile sized so double-buffered VMEM stays under ~24 MiB (v7x-safe)
    n = len(embs)
    itemsize = embs[0].dtype.itemsize
    bytes_per_row = lane * (4 + 2 * n * itemsize)  # bits + n inputs + n outputs
    vmem_budget = 24 * 1024 * 1024
    tile_rows = (vmem_budget // 2 // bytes_per_row) // 8 * 8  # //2: double-buffer
    tile_rows = int(max(8, min(tile_rows, 1024)))
    if tile_rows >= n_rows:
        tile_rows = n_rows  # single block covers all rows (block == full dim)

    grid = (pl.cdiv(n_rows, tile_rows),)

    # ---- bernoulli as an integer threshold compare on uint32 random bits
    # P(bits_u32 < t) = t / 2**32 == keep_prob.  Clamp for keep_prob ~ 1.0.
    threshold_u32 = min(int(round(keep_prob * (1 << 32))), (1 << 32) - 1)
    threshold_i32 = threshold_u32 - (1 << 31)  # signed compare after sign-bit flip

    key = jax.random.PRNGKey(seed)
    bits_u32 = jax.random.bits(key, (n_rows, lane), dtype=jnp.uint32)
    # Flip the sign bit and reinterpret as int32 so the in-kernel compare is a
    # plain signed compare (monotone mapping: u < t  <=>  i < t - 2**31).
    bits_i32 = lax.bitcast_convert_type(bits_u32 ^ jnp.uint32(0x80000000), jnp.int32)

    flat = [e.reshape(n_rows, lane) for e in embs]

    block = (tile_rows, lane)
    spec = pl.BlockSpec(block, lambda i: (i, 0))
    kernel = _make_embedding_dropout_kernel(n, threshold_i32, inv_keep)

    out = pl.pallas_call(
        kernel,
        out_shape=tuple(
            jax.ShapeDtypeStruct((n_rows, lane), e.dtype) for e in flat
        ),
        grid=grid,
        in_specs=[spec] * (n + 1),          # bits + n embeddings
        out_specs=tuple([spec] * n),
        compiler_params=pltpu.CompilerParams(
            dimension_semantics=("parallel",),
        ),
    )(bits_i32, *flat)

    return tuple(o.reshape(shape) for o in out)


if __name__ == "__main__":
    key = jax.random.PRNGKey(0)
    k0, k1 = jax.random.split(key)

    # Two embedding tensors of identical shape (batch=2, seq=8, hidden=32).
    batch, seq, hidden = 2, 8, 32
    emb0 = jax.random.normal(k0, (batch, seq, hidden), dtype=jnp.float32)
    emb1 = jax.random.normal(k1, (batch, seq, hidden), dtype=jnp.float32)

    p = 0.5
    out0, out1 = embedding_dropout((emb0, emb1), p=p, seed=1234, training=True)
    jax.block_until_ready(out0)
    jax.block_until_ready(out1)

    # Sanity checks: same mask applied to both embeddings, values are either
    # zeroed or scaled by exactly 1/(1-p).
    keep = 1.0 - p
    ratio0 = out0 / jnp.where(emb0 == 0, 1.0, emb0)
    ratio1 = out1 / jnp.where(emb1 == 0, 1.0, emb1)
    ok_same_mask = bool(jnp.allclose(ratio0, ratio1, atol=1e-5))
    ok_values = bool(
        jnp.all(
            jnp.logical_or(
                jnp.isclose(ratio0, 0.0, atol=1e-5),
                jnp.isclose(ratio0, 1.0 / keep, atol=1e-5),
            )
        )
    )
    # Eval / p=0 path returns inputs unchanged.
    e0, e1 = embedding_dropout((emb0, emb1), p=p, seed=1234, training=False)
    ok_eval = bool(jnp.array_equal(e0, emb0) and jnp.array_equal(e1, emb1))

    assert ok_same_mask and ok_values and ok_eval
    print("KERNEL_OK")
</pallas_src>

<mosaic_0001>
module attributes {stable_mosaic.version = 11 : i64} {
  func.func @kernel(%arg0: i32, %arg1: memref<1x512xi32, #tpu.memory_space<vmem>>, %arg2: memref<1x512xf32, #tpu.memory_space<vmem>>, %arg3: memref<1x512xf32, #tpu.memory_space<vmem>>, %arg4: memref<1x512xf32, #tpu.memory_space<vmem>>, %arg5: memref<1x512xf32, #tpu.memory_space<vmem>>) attributes {dimension_semantics = [#tpu.dimension_semantics<parallel>], iteration_bounds = array<i64: 1>, scalar_prefetch = 0 : i64, scratch_operands = 0 : i64, tpu.core_type = #tpu.core_type<tc>, window_params = [{transform_indices = @transform_0, window_bounds = array<i64: 1, 512>}, {transform_indices = @transform_1, window_bounds = array<i64: 1, 512>}, {transform_indices = @transform_2, window_bounds = array<i64: 1, 512>}, {transform_indices = @transform_3, window_bounds = array<i64: 1, 512>}, {transform_indices = @transform_4, window_bounds = array<i64: 1, 512>}]} {
    %c0 = arith.constant 0 : index
    %c0_0 = arith.constant 0 : index
    %0 = vector.load %arg1[%c0, %c0_0] : memref<1x512xi32, #tpu.memory_space<vmem>>, vector<1x512xi32>
    %c0_i32 = arith.constant 0 : i32
    %1 = vector.broadcast %c0_i32 : i32 to vector<1x512xi32>
    %2 = arith.cmpi slt, %0, %1 : vector<1x512xi32>
    %c0_1 = arith.constant 0 : index
    %c0_2 = arith.constant 0 : index
    %3 = vector.load %arg2[%c0_1, %c0_2] : memref<1x512xf32, #tpu.memory_space<vmem>>, vector<1x512xf32>
    %cst = arith.constant 2.000000e+00 : f32
    %4 = vector.broadcast %cst : f32 to vector<1x512xf32>
    %5 = arith.mulf %3, %4 : vector<1x512xf32>
    %cst_3 = arith.constant 0.000000e+00 : f32
    %6 = vector.broadcast %cst_3 : f32 to vector<1x512xf32>
    %7 = arith.select %2, %5, %6 : vector<1x512xi1>, vector<1x512xf32>
    %c0_4 = arith.constant 0 : index
    %c0_5 = arith.constant 0 : index
    %8 = vector.load %arg4[%c0_4, %c0_5] : memref<1x512xf32, #tpu.memory_space<vmem>>, vector<1x512xf32>
    tpu.vector_store %arg4[%c0_4, %c0_5], %7 {strides = array<i32>} : memref<1x512xf32, #tpu.memory_space<vmem>>, vector<1x512xf32>,
    %c0_6 = arith.constant 0 : index
    %c0_7 = arith.constant 0 : index
    %9 = vector.load %arg3[%c0_6, %c0_7] : memref<1x512xf32, #tpu.memory_space<vmem>>, vector<1x512xf32>
    %cst_8 = arith.constant 2.000000e+00 : f32
    %10 = vector.broadcast %cst_8 : f32 to vector<1x512xf32>
    %11 = arith.mulf %9, %10 : vector<1x512xf32>
    %cst_9 = arith.constant 0.000000e+00 : f32
    %12 = vector.broadcast %cst_9 : f32 to vector<1x512xf32>
    %13 = arith.select %2, %11, %12 : vector<1x512xi1>, vector<1x512xf32>
    %c0_10 = arith.constant 0 : index
    %c0_11 = arith.constant 0 : index
    %14 = vector.load %arg5[%c0_10, %c0_11] : memref<1x512xf32, #tpu.memory_space<vmem>>, vector<1x512xf32>
    tpu.vector_store %arg5[%c0_10, %c0_11], %13 {strides = array<i32>} : memref<1x512xf32, #tpu.memory_space<vmem>>, vector<1x512xf32>,
    return
  }
  func.func @transform_0(%arg0: i32) -> (i32, i32) {
    %c0_i32 = arith.constant 0 : i32
    %c0_i32_0 = arith.constant 0 : i32
    return %arg0, %c0_i32 : i32, i32
  }
  func.func @transform_1(%arg0: i32) -> (i32, i32) {
    %c0_i32 = arith.constant 0 : i32
    %c0_i32_0 = arith.constant 0 : i32
    return %arg0, %c0_i32 : i32, i32
  }
  func.func @transform_2(%arg0: i32) -> (i32, i32) {
    %c0_i32 = arith.constant 0 : i32
    %c0_i32_0 = arith.constant 0 : i32
    return %arg0, %c0_i32 : i32, i32
  }
  func.func @transform_3(%arg0: i32) -> (i32, i32) {
    %c0_i32 = arith.constant 0 : i32
    %c0_i32_0 = arith.constant 0 : i32
    return %arg0, %c0_i32 : i32, i32
  }
  func.func @transform_4(%arg0: i32) -> (i32, i32) {
    %c0_i32 = arith.constant 0 : i32
    %c0_i32_0 = arith.constant 0 : i32
    return %arg0, %c0_i32 : i32, i32
  }
}

</mosaic_0001>

<bundles_post_ra>
// kernel: tpu_custom_call.1
= control target key start
LH: loop header
LB: loop body
LE: loop exit
PB: predicated region body
PF: predicated region fallthrough
CT: control target
= control target key end

     0   :  { %10 = vsyncpa [#allocation3], 0  ;;  %s266_s0 = inlined_call_operand.hbm [shape: s32[1,512], index: 0, kind: input, shape index: {}]   ;;  %s267_s1 = inlined_call_operand.hbm [shape: f32[1,512], index: 1, kind: input, shape index: {}]   ;;  %s268_s2 = inlined_call_operand.vmem [shape: f32[1,512], index: 2, kind: input, shape index: {}]   ;;  %s269_s3 = inlined_call_operand.hbm [shape: f32[1,512], index: 3, kind: output, shape index: {0}]   ;;  %s270_s4 = inlined_call_operand.hbm [shape: f32[1,512], index: 4, kind: output, shape index: {1}]  }
   0x1   :  { %11 = vsyncpa [#allocation6], 0 }
   0x2   :  { %12 = vsyncpa [#allocation4], 0 }
   0x3   :  { %13 = vsyncpa [#allocation9], 0  ;;  %s186_s15 = smov [#allocation2]   ;;  %s187_s17 = smov [#allocation5]  }
   0x4   :  { %s20_s16 = sshll.u32 %s186_s15, 4  ;;  %s30_s18 = sshll.u32 %s187_s17, 4  ;;  %s21_s16 = int_to_ptr.vmem [resolvable:$true] %s20_s16  ;;  %s31_s18 = int_to_ptr.vmem [resolvable:$true] %s30_s18 }
   0x5   :  { %s90_s21 = scalar_lea.hbm %s266_s0, 64 }
   0x6   :  { %p91_p0 = scmp.ne.s32.totalorder %s266_s0, %s90_s21  ;;  %p94_p1 = scmp.lt.u32.totalorder %s90_s21, %s266_s0 }
   0x8   :  { %p96_p2 = pnand %p94_p1, %p91_p0 }
   0xa   :  { %99 = shalt.err (!%p96_p2)
}
   0xb   :  { %s100_s26 = scalar_lea.vmem %s21_s16, 64  ;;  %p105_p4 = scmp.lt.s32.totalorder %s21_s16, %s21_s16 }
   0xc   :  { %p101_p3 = scmp.ne.s32.totalorder %s21_s16, %s100_s26  ;;  %p106_p5 = scmp.lt.s32.totalorder %s100_s26, %s100_s26 }
   0xe   :  { %p107_p6 = por %p106_p5, %p105_p4 }
  0x10   :  { %p108_p7 = pnand %p107_p6, %p101_p3 }
  0x12   :  { %111 = shalt.err (!%p108_p7)
}
  0x13   :  { %23 = dma.hbm_to_vmem [thread:$0]  %s266_s0, 64, %s21_s16, [#allocation3]  }
  0x14   :  { %s112_s5 = scalar_lea.hbm %s267_s1, 64 }
  0x15   :  { %p113_p8 = scmp.ne.s32.totalorder %s267_s1, %s112_s5  ;;  %p116_p9 = scmp.lt.u32.totalorder %s112_s5, %s267_s1 }
  0x17   :  { %p118_p10 = pnand %p116_p9, %p113_p8 }
  0x19   :  { %121 = shalt.err (!%p118_p10)
}
  0x1a   :  { %s122_s10 = scalar_lea.vmem %s31_s18, 64  ;;  %p127_p12 = scmp.lt.s32.totalorder %s31_s18, %s31_s18 }
  0x1b   :  { %p123_p11 = scmp.ne.s32.totalorder %s31_s18, %s122_s10  ;;  %p128_p13 = scmp.lt.s32.totalorder %s122_s10, %s122_s10 }
  0x1d   :  { %p129_p0 = por %p128_p13, %p127_p12 }
  0x1f   :  { %p130_p1 = pnand %p129_p0, %p123_p11 }
  0x21   :  { %133 = shalt.err (!%p130_p1)
}
  0x22   :  { %33 = dma.hbm_to_vmem [thread:$0]  %s267_s1, 64, %s31_s18, [#allocation6]  }
  0x23   :  { %178 = dma.done.wait [#allocation3], 64  }
  0x24   :  { %179 = vsyncadd [#allocation3], 4294967232 }
  0x25   :  { %180 = dma.done.wait [#allocation6], 64  }
  0x26   :  { %181 = vsyncadd [#allocation6], 4294967232  ;;  %v47_v0 = vlaneseq  ;;  %s188_s12 = smov [#allocation7]   ;;  %s189_s14 = smov [#allocation8]   ;;  %v42_v1 = vld [vmem:[#allocation2] sm:$0xf] }
  0x27   :  { %s62_s13 = sshll.u32 %s188_s12, 4  ;;  %s72_s15 = sshll.u32 %s189_s14, 4  ;;  %v44_v2 = vld [vmem:[#allocation5] sm:$0xf]  ;;  %v52_v3 = vld [vmem:[%s268_s2] sm:$0xf]  ;;  %s63_s13 = int_to_ptr.vmem [resolvable:$true] %s62_s13  ;;  %s73_s15 = int_to_ptr.vmem [resolvable:$true] %s72_s15 }
  0x28   :  { %vm43_vm0 = vcmp.lt.s32.totalorder %v42_v1, 0  ;;  %v45_v4 = vmul.f32 2.0, %v44_v2  ;;  %vm49_vm1 = vcmp.lt.s32.totalorder %v47_v0, 512  ;;  %v53_v5 = vmul.f32 2.0, %v52_v3  ;;  %s134_s1 = scalar_lea.vmem %s63_s13, 64  ;;  %p139_p3 = scmp.lt.s32.totalorder %s63_s13, %s63_s13 }
  0x29   :  { %p135_p2 = scmp.ne.s32.totalorder %s63_s13, %s134_s1  ;;  %p140_p4 = scmp.lt.s32.totalorder %s134_s1, %s134_s1 }
  0x2a   :  { %v46_v6 = vsel %vm43_vm0, %v45_v4, 0.0  ;;  %v54_v7 = vsel %vm43_vm0, %v53_v5, 0.0 }
  0x2b   :  { %51 = vst.msk [vmem:[#allocation7] sm:$0xf] %vm49_vm1, %v46_v6  ;;  %55 = vst.msk [vmem:[#allocation8] sm:$0xf] %vm49_vm1, %v54_v7  ;;  %p141_p5 = por %p140_p4, %p139_p3 }
  0x2d   :  { %p142_p6 = pnand %p141_p5, %p135_p2 }
  0x2f   :  { %145 = shalt.err (!%p142_p6)
}
  0x30   :  { %s146_s2 = scalar_lea.hbm %s269_s3, 64 }
  0x31   :  { %p147_p7 = scmp.ne.s32.totalorder %s269_s3, %s146_s2  ;;  %p150_p8 = scmp.lt.u32.totalorder %s146_s2, %s269_s3 }
  0x33   :  { %p152_p9 = pnand %p150_p8, %p147_p7 }
  0x35   :  { %155 = shalt.err (!%p152_p9)
}
  0x36   :  { %65 = dma.vmem_to_hbm [thread:$0]  %s63_s13, 64, %s269_s3, [#allocation4]  }
  0x37   :  { %s156_s26 = scalar_lea.vmem %s73_s15, 64  ;;  %p161_p11 = scmp.lt.s32.totalorder %s73_s15, %s73_s15 }
  0x38   :  { %p157_p10 = scmp.ne.s32.totalorder %s73_s15, %s156_s26  ;;  %p162_p12 = scmp.lt.s32.totalorder %s156_s26, %s156_s26 }
  0x3a   :  { %p163_p13 = por %p162_p12, %p161_p11 }
  0x3c   :  { %p164_p0 = pnand %p163_p13, %p157_p10 }
  0x3e   :  { %167 = shalt.err (!%p164_p0)
}
  0x3f   :  { %s168_s29 = scalar_lea.hbm %s270_s4, 64 }
  0x40   :  { %p169_p1 = scmp.ne.s32.totalorder %s270_s4, %s168_s29  ;;  %p172_p2 = scmp.lt.u32.totalorder %s168_s29, %s270_s4 }
  0x42   :  { %p174_p3 = pnand %p172_p2, %p169_p1 }
  0x44   :  { %177 = shalt.err (!%p174_p3)
}
  0x45   :  { %75 = dma.vmem_to_hbm [thread:$0]  %s73_s15, 64, %s270_s4, [#allocation9]  }
  0x46   :  { %182 = dma.done.wait [#allocation4], 64  }
  0x47   :  { %183 = vsyncadd [#allocation4], 4294967232 }
  0x48   :  { %184 = dma.done.wait [#allocation9], 64  }
  0x49   :  { %185 = vsyncadd [#allocation9], 4294967232 }
  0x4a   :  { %82 = vsyncpa [#allocation3], 1 }
  0x4b   :  { %83 = vsyncpa [#allocation6], 1 }
  0x4c   :  { %84 = vsyncpa [#allocation4], 1 }
  0x4d   :  { %85 = vsyncpa [#allocation9], 1 }

</bundles_post_ra>
